<compile_context>
chip_gen: v6e
topology: v6e:2x2x1
jax: 0.10.0
libtpu: 0.0.40
codegen_flags: <defaults>
</compile_context>

<pallas_src>
import jax
import jax.numpy as jnp
from jax.experimental import pallas as pl
from jax.experimental.pallas import tpu as pltpu


def ffn_kernel(x_ref, w1_ref, b1_ref, w2_ref, p_ref, o_ref, ln_ref, acc_ref):
    """Grid = (row_tiles, hidden_tiles). x/o blocks: (tm, size); W1: (size, tk);
    b1: (1, tk); W2: (tk, size); p: (3, size) = [a_2, b_ln, b2]."""
    k = pl.program_id(1)
    nk = pl.num_programs(1)
    eps = 1e-6

    @pl.when(k == 0)
    def _():
        x = x_ref[...].astype(jnp.float32)                      # (tm, size)
        size = x.shape[-1]
        p = p_ref[...].astype(jnp.float32)
        a2, bln = p[0:1, :], p[1:2, :]
        # --- LayerNorm: mean / unbiased std (ddof=1) / eps added to std ---
        mean = jnp.sum(x, axis=-1, keepdims=True) * (1.0 / size)
        d = x - mean
        var = jnp.sum(d * d, axis=-1, keepdims=True) * (1.0 / (size - 1))
        inv_std = pl.reciprocal(jnp.sqrt(var) + eps, approx=True)
        ln = a2 * (d * inv_std) + bln
        ln_ref[...] = ln.astype(ln_ref.dtype)                   # bf16 MXU operand
        acc_ref[...] = jnp.zeros_like(acc_ref)

    # --- per hidden tile: h_k = relu(ln @ W1_k + b1_k); acc += h_k @ W2_k ---
    h = jnp.dot(ln_ref[...], w1_ref[...], preferred_element_type=jnp.float32)
    h = jnp.maximum(h + b1_ref[...].astype(jnp.float32), 0.0)   # dropout_1 identity
    acc_ref[...] += jnp.dot(h.astype(w2_ref.dtype), w2_ref[...],
                            preferred_element_type=jnp.float32)

    @pl.when(k == nk - 1)
    def _():
        b2 = p_ref[...].astype(jnp.float32)[2:3, :]
        x = x_ref[...].astype(jnp.float32)
        o_ref[...] = (acc_ref[...] + b2 + x).astype(o_ref.dtype)  # dropout_2 identity


def _round_up(v, m):
    return ((v + m - 1) // m) * m


def _vmem_capacity_bytes():
    try:
        return int(pltpu.get_tpu_info().vmem_capacity_bytes)
    except Exception:
        return 64 * 1024 * 1024      # conservative: v7x per-TensorCore VMEM


def _choose_tk(hidden):
    for tk in (2048, 1024, 512, 256, 128):
        if hidden % tk == 0:
            return tk
    return hidden                     # small / irregular hidden: keep untiled


def _footprint_bytes(tm, tk, size, x_bytes, w_bytes):
    io = tm * size * x_bytes * 2 * 2                   # x + out blocks, double-buffered
    weights = 2 * (size * tk) * w_bytes * 2            # W1/W2 tiles, double-buffered
    biases = (8 * tk + 8 * size) * 4 * 2               # b1 tile + packed p (sublane-padded)
    scratch = tm * size * (2 + 4)                      # ln (bf16) + acc (f32)
    interm = tm * tk * 6 + tm * size * 8               # h f32 + bf16 cast + LN temporaries
    return io + weights + biases + scratch + interm


def _choose_tm(n, tk, size, x_bytes, w_bytes, budget):
    n8 = _round_up(n, 8)
    for tm in (2048, 1024, 512, 256, 128, 64, 8):      # MXU-row-aligned first
        tm_eff = min(tm, n8)
        if _footprint_bytes(tm_eff, tk, size, x_bytes, w_bytes) <= budget:
            return tm_eff
    return min(8, n8)


def positionwise_ffn(x, w1, b1, w2, b2, a2, bln, *, tm=None,
                     weight_dtype=jnp.bfloat16):
    """x: (batch, seq, size). w1: (size, hidden), w2: (hidden, size) (pre-transposed)."""
    batch, seq, size = x.shape
    hidden = w1.shape[1]
    n = batch * seq

    x_bytes = jnp.dtype(x.dtype).itemsize
    w_bytes = jnp.dtype(weight_dtype).itemsize

    capacity = _vmem_capacity_bytes()
    tk = _choose_tk(hidden)
    if tm is None:
        tm = _choose_tm(n, tk, size, x_bytes, w_bytes, budget=int(0.7 * capacity))

    grid_m = pl.cdiv(n, tm)            # ragged tail handled by Pallas masked writeback
    grid_k = max(hidden // tk, 1)

    x2d = x.reshape(n, size)
    w1b = w1.astype(weight_dtype)
    w2b = w2.astype(weight_dtype)
    b1_2d = b1.reshape(1, hidden).astype(jnp.float32)
    # pack the three (size,) vectors into one block: rows = [a_2, b_ln, b2]
    p = jnp.stack([a2, bln, b2]).astype(jnp.float32)   # (3, size)

    fp = _footprint_bytes(tm, tk, size, x_bytes, w_bytes)
    vmem_limit = int(min(int(0.8 * capacity),
                         max(int(1.5 * fp) + (16 << 20), 32 << 20)))

    out2d = pl.pallas_call(
        ffn_kernel,
        out_shape=jax.ShapeDtypeStruct((n, size), x.dtype),
        grid_spec=pltpu.PrefetchScalarGridSpec(
            num_scalar_prefetch=0,
            grid=(grid_m, grid_k),
            in_specs=[
                pl.BlockSpec((tm, size), lambda i, k: (i, 0)),      # x rows (resident over k)
                pl.BlockSpec((size, tk), lambda i, k: (0, k)),      # W1 tile (bf16)
                pl.BlockSpec((1, tk), lambda i, k: (0, k)),         # b1 tile
                pl.BlockSpec((tk, size), lambda i, k: (k, 0)),      # W2 tile (bf16)
                pl.BlockSpec((3, size), lambda i, k: (0, 0)),       # [a_2, b_ln, b2]
            ],
            out_specs=pl.BlockSpec((tm, size), lambda i, k: (i, 0)),
            scratch_shapes=[
                pltpu.VMEM((tm, size), jnp.bfloat16),               # ln (MXU operand)
                pltpu.VMEM((tm, size), jnp.float32),                # y accumulator
            ],
        ),
        compiler_params=pltpu.CompilerParams(
            dimension_semantics=("parallel", "arbitrary"),
            vmem_limit_bytes=vmem_limit,
        ),
    )(x2d, w1b, b1_2d, w2b, p)

    return out2d.reshape(batch, seq, size)


if __name__ == "__main__":
    # small but lane-dense shapes: batch=2, seq=8, size=128, hidden=256
    batch, seq, size, hidden = 2, 8, 128, 256

    key = jax.random.PRNGKey(0)
    kx, kw1, kb1, kw2, kb2 = jax.random.split(key, 5)

    x = jax.random.normal(kx, (batch, seq, size), dtype=jnp.float32)

    # torch nn.Linear weights, stored pre-transposed as (in, out)
    w1 = jax.random.normal(kw1, (size, hidden), dtype=jnp.float32) * (1.0 / jnp.sqrt(size))
    b1 = jax.random.normal(kb1, (hidden,), dtype=jnp.float32) * 0.01
    w2 = jax.random.normal(kw2, (hidden, size), dtype=jnp.float32) * (1.0 / jnp.sqrt(hidden))
    b2 = jax.random.normal(kb2, (size,), dtype=jnp.float32) * 0.01
    a2 = jnp.ones((size,), dtype=jnp.float32)     # LayerNorm scale
    bln = jnp.zeros((size,), dtype=jnp.float32)   # LayerNorm shift

    out = positionwise_ffn(x, w1, b1, w2, b2, a2, bln)
    jax.block_until_ready(out)

    # pure-JAX f32 reference (same math as the PyTorch module, eval mode)
    def ref(x):
        eps = 1e-6
        mean = x.mean(-1, keepdims=True)
        std = jnp.sqrt(((x - mean) ** 2).sum(-1, keepdims=True) / (size - 1))
        ln = a2 * (x - mean) / (std + eps) + bln
        h = jnp.maximum(ln @ w1 + b1, 0.0)
        return (h @ w2 + b2) + x

    expected = ref(x)
    # bf16 MXU operands with f32 accumulation -> loose-but-meaningful tolerance
    max_err = float(jnp.max(jnp.abs(out - expected)))
    assert jnp.allclose(out, expected, atol=5e-2, rtol=5e-2), max_err
    print("KERNEL_OK")
</pallas_src>

<mosaic_0001>
module attributes {stable_mosaic.version = 11 : i64} {
  func.func @ffn_kernel(%arg0: i32, %arg1: i32, %arg2: memref<16x128xf32, #tpu.memory_space<vmem>>, %arg3: memref<128x256xbf16, #tpu.memory_space<vmem>>, %arg4: memref<1x256xf32, #tpu.memory_space<vmem>>, %arg5: memref<256x128xbf16, #tpu.memory_space<vmem>>, %arg6: memref<3x128xf32, #tpu.memory_space<vmem>>, %arg7: memref<16x128xf32, #tpu.memory_space<vmem>>, %arg8: memref<16x128xbf16, #tpu.memory_space<vmem>>, %arg9: memref<16x128xf32, #tpu.memory_space<vmem>>) attributes {dimension_semantics = [#tpu.dimension_semantics<parallel>, #tpu.dimension_semantics<arbitrary>], iteration_bounds = array<i64: 1, 1>, scalar_prefetch = 0 : i64, scratch_operands = 2 : i64, tpu.core_type = #tpu.core_type<tc>, window_params = [{transform_indices = @transform_0, window_bounds = array<i64: 16, 128>}, {transform_indices = @transform_1, window_bounds = array<i64: 128, 256>}, {transform_indices = @transform_2, window_bounds = array<i64: 1, 256>}, {transform_indices = @transform_3, window_bounds = array<i64: 256, 128>}, {pipeline_mode = #tpu.pipeline_mode<synchronous>, transform_indices = @transform_4, window_bounds = array<i64: 3, 128>}, {transform_indices = @transform_5, window_bounds = array<i64: 16, 128>}]} {
    %c0_i32 = arith.constant 0 : i32
    %0 = arith.cmpi eq, %arg1, %c0_i32 : i32
    %1 = arith.extui %0 : i1 to i32
    %c0_i32_0 = arith.constant 0 : i32
    %2 = arith.cmpi ne, %1, %c0_i32_0 : i32
    scf.if %2 {
      %c0_16 = arith.constant 0 : index
      %c0_17 = arith.constant 0 : index
      %20 = vector.load %arg2[%c0_16, %c0_17] : memref<16x128xf32, #tpu.memory_space<vmem>>, vector<16x128xf32>
      %c0_18 = arith.constant 0 : index
      %c0_19 = arith.constant 0 : index
      %21 = vector.load %arg6[%c0_18, %c0_19] : memref<3x128xf32, #tpu.memory_space<vmem>>, vector<3x128xf32>
      %22 = vector.extract_strided_slice %21 {offsets = [0, 0], sizes = [1, 128], strides = [1, 1]} : vector<3x128xf32> to vector<1x128xf32>
      %23 = vector.extract_strided_slice %21 {offsets = [1, 0], sizes = [1, 128], strides = [1, 1]} : vector<3x128xf32> to vector<1x128xf32>
      %cst_20 = arith.constant dense<0.000000e+00> : vector<16xf32>
      %24 = vector.multi_reduction <add>, %20, %cst_20 [1] : vector<16x128xf32> to vector<16xf32>
      %25 = vector.shape_cast %24 : vector<16xf32> to vector<16x1xf32>
      %cst_21 = arith.constant 7.812500e-03 : f32
      %26 = vector.broadcast %cst_21 : f32 to vector<16x1xf32>
      %27 = arith.mulf %25, %26 : vector<16x1xf32>
      %28 = vector.broadcast %27 : vector<16x1xf32> to vector<16x128xf32>
      %29 = arith.subf %20, %28 : vector<16x128xf32>
      %30 = arith.mulf %29, %29 : vector<16x128xf32>
      %cst_22 = arith.constant dense<0.000000e+00> : vector<16xf32>
      %31 = vector.multi_reduction <add>, %30, %cst_22 [1] : vector<16x128xf32> to vector<16xf32>
      %32 = vector.shape_cast %31 : vector<16xf32> to vector<16x1xf32>
      %cst_23 = arith.constant 0.00787401571 : f32
      %33 = vector.broadcast %cst_23 : f32 to vector<16x1xf32>
      %34 = arith.mulf %32, %33 : vector<16x1xf32>
      %35 = math.sqrt %34 : vector<16x1xf32>
      %cst_24 = arith.constant 9.99999997E-7 : f32
      %36 = vector.broadcast %cst_24 : f32 to vector<16x1xf32>
      %37 = arith.addf %35, %36 : vector<16x1xf32>
      %38 = tpu.reciprocal %37 {approx = true} : vector<16x1xf32> -> vector<16x1xf32>
      %39 = vector.broadcast %38 : vector<16x1xf32> to vector<16x128xf32>
      %40 = arith.mulf %29, %39 : vector<16x128xf32>
      %41 = vector.broadcast %22 : vector<1x128xf32> to vector<16x128xf32>
      %42 = arith.mulf %41, %40 : vector<16x128xf32>
      %43 = vector.broadcast %23 : vector<1x128xf32> to vector<16x128xf32>
      %44 = arith.addf %42, %43 : vector<16x128xf32>
      %45 = arith.truncf %44 : vector<16x128xf32> to vector<16x128xbf16>
      %c0_25 = arith.constant 0 : index
      %c0_26 = arith.constant 0 : index
      %46 = vector.load %arg8[%c0_25, %c0_26] : memref<16x128xbf16, #tpu.memory_space<vmem>>, vector<16x128xbf16>
      tpu.vector_store %arg8[%c0_25, %c0_26], %45 {strides = array<i32>} : memref<16x128xbf16, #tpu.memory_space<vmem>>, vector<16x128xbf16>,
      %cst_27 = arith.constant 0.000000e+00 : f32
      %47 = vector.broadcast %cst_27 : f32 to vector<16x128xf32>
      %c0_28 = arith.constant 0 : index
      %c0_29 = arith.constant 0 : index
      %48 = vector.load %arg9[%c0_28, %c0_29] : memref<16x128xf32, #tpu.memory_space<vmem>>, vector<16x128xf32>
      tpu.vector_store %arg9[%c0_28, %c0_29], %47 {strides = array<i32>} : memref<16x128xf32, #tpu.memory_space<vmem>>, vector<16x128xf32>,
    } else {
    }
    %c0 = arith.constant 0 : index
    %c0_1 = arith.constant 0 : index
    %3 = vector.load %arg8[%c0, %c0_1] : memref<16x128xbf16, #tpu.memory_space<vmem>>, vector<16x128xbf16>
    %c0_2 = arith.constant 0 : index
    %c0_3 = arith.constant 0 : index
    %4 = vector.load %arg3[%c0_2, %c0_3] : memref<128x256xbf16, #tpu.memory_space<vmem>>, vector<128x256xbf16>
    %cst = arith.constant dense<0.000000e+00> : vector<16x256xf32>
    %5 = tpu.matmul %3, %4, %cst {dimension_numbers = #tpu.dot_dimension_numbers<[1], [0], [0], [1], [0, 0, 1, 1], [], []>} : vector<16x128xbf16>, vector<128x256xbf16>, vector<16x256xf32> -> vector<16x256xf32>
    %c0_4 = arith.constant 0 : index
    %c0_5 = arith.constant 0 : index
    %6 = vector.load %arg4[%c0_4, %c0_5] : memref<1x256xf32, #tpu.memory_space<vmem>>, vector<1x256xf32>
    %7 = vector.broadcast %6 : vector<1x256xf32> to vector<16x256xf32>
    %8 = arith.addf %5, %7 : vector<16x256xf32>
    %cst_6 = arith.constant 0.000000e+00 : f32
    %9 = vector.broadcast %cst_6 : f32 to vector<16x256xf32>
    %10 = arith.maximumf %8, %9 : vector<16x256xf32>
    %c0_7 = arith.constant 0 : index
    %c0_8 = arith.constant 0 : index
    %11 = vector.load %arg9[%c0_7, %c0_8] : memref<16x128xf32, #tpu.memory_space<vmem>>, vector<16x128xf32>
    %12 = arith.truncf %10 : vector<16x256xf32> to vector<16x256xbf16>
    %c0_9 = arith.constant 0 : index
    %c0_10 = arith.constant 0 : index
    %13 = vector.load %arg5[%c0_9, %c0_10] : memref<256x128xbf16, #tpu.memory_space<vmem>>, vector<256x128xbf16>
    %cst_11 = arith.constant dense<0.000000e+00> : vector<16x128xf32>
    %14 = tpu.matmul %12, %13, %cst_11 {dimension_numbers = #tpu.dot_dimension_numbers<[1], [0], [0], [1], [0, 0, 1, 1], [], []>} : vector<16x256xbf16>, vector<256x128xbf16>, vector<16x128xf32> -> vector<16x128xf32>
    %15 = arith.addf %11, %14 : vector<16x128xf32>
    %c0_12 = arith.constant 0 : index
    %c0_13 = arith.constant 0 : index
    %16 = vector.load %arg9[%c0_12, %c0_13] : memref<16x128xf32, #tpu.memory_space<vmem>>, vector<16x128xf32>
    tpu.vector_store %arg9[%c0_12, %c0_13], %15 {strides = array<i32>} : memref<16x128xf32, #tpu.memory_space<vmem>>, vector<16x128xf32>,
    %c0_i32_14 = arith.constant 0 : i32
    %17 = arith.cmpi eq, %arg1, %c0_i32_14 : i32
    %18 = arith.extui %17 : i1 to i32
    %c0_i32_15 = arith.constant 0 : i32
    %19 = arith.cmpi ne, %18, %c0_i32_15 : i32
    scf.if %19 {
      %c0_16 = arith.constant 0 : index
      %c0_17 = arith.constant 0 : index
      %20 = vector.load %arg6[%c0_16, %c0_17] : memref<3x128xf32, #tpu.memory_space<vmem>>, vector<3x128xf32>
      %21 = vector.extract_strided_slice %20 {offsets = [2, 0], sizes = [1, 128], strides = [1, 1]} : vector<3x128xf32> to vector<1x128xf32>
      %c0_18 = arith.constant 0 : index
      %c0_19 = arith.constant 0 : index
      %22 = vector.load %arg2[%c0_18, %c0_19] : memref<16x128xf32, #tpu.memory_space<vmem>>, vector<16x128xf32>
      %c0_20 = arith.constant 0 : index
      %c0_21 = arith.constant 0 : index
      %23 = vector.load %arg9[%c0_20, %c0_21] : memref<16x128xf32, #tpu.memory_space<vmem>>, vector<16x128xf32>
      %24 = vector.broadcast %21 : vector<1x128xf32> to vector<16x128xf32>
      %25 = arith.addf %23, %24 : vector<16x128xf32>
      %26 = arith.addf %25, %22 : vector<16x128xf32>
      %c0_22 = arith.constant 0 : index
      %c0_23 = arith.constant 0 : index
      %27 = vector.load %arg7[%c0_22, %c0_23] : memref<16x128xf32, #tpu.memory_space<vmem>>, vector<16x128xf32>
      tpu.vector_store %arg7[%c0_22, %c0_23], %26 {strides = array<i32>} : memref<16x128xf32, #tpu.memory_space<vmem>>, vector<16x128xf32>,
    } else {
    }
    return
  }
  func.func @transform_0(%arg0: i32, %arg1: i32) -> (i32, i32) {
    %c0_i32 = arith.constant 0 : i32
    %c0_i32_0 = arith.constant 0 : i32
    return %arg0, %c0_i32 : i32, i32
  }
  func.func @transform_1(%arg0: i32, %arg1: i32) -> (i32, i32) {
    %c0_i32 = arith.constant 0 : i32
    %c0_i32_0 = arith.constant 0 : i32
    return %c0_i32, %arg1 : i32, i32
  }
  func.func @transform_2(%arg0: i32, %arg1: i32) -> (i32, i32) {
    %c0_i32 = arith.constant 0 : i32
    %c0_i32_0 = arith.constant 0 : i32
    return %c0_i32, %arg1 : i32, i32
  }
  func.func @transform_3(%arg0: i32, %arg1: i32) -> (i32, i32) {
    %c0_i32 = arith.constant 0 : i32
    %c0_i32_0 = arith.constant 0 : i32
    return %arg1, %c0_i32 : i32, i32
  }
  func.func @transform_4(%arg0: i32, %arg1: i32) -> (i32, i32) {
    %c0_i32 = arith.constant 0 : i32
    %c0_i32_0 = arith.constant 0 : i32
    %c0_i32_1 = arith.constant 0 : i32
    return %c0_i32, %c0_i32_0 : i32, i32
  }
  func.func @transform_5(%arg0: i32, %arg1: i32) -> (i32, i32) {
    %c0_i32 = arith.constant 0 : i32
    %c0_i32_0 = arith.constant 0 : i32
    return %arg0, %c0_i32 : i32, i32
  }
}

</mosaic_0001>

<bundles_post_ra>
// kernel: tpu_custom_call.1
= control target key start
LH: loop header
LB: loop body
LE: loop exit
PB: predicated region body
PF: predicated region fallthrough
CT: control target
= control target key end

     0   :  { %10 = vsyncpa [#allocation5], 0  ;;  %s803_s0 = inlined_call_operand.hbm [shape: f32[16,128], index: 0, kind: input, shape index: {}]   ;;  %s804_s1 = inlined_call_operand.hbm [shape: bf16[128,256], index: 1, kind: input, shape index: {}]   ;;  %s805_s2 = inlined_call_operand.vmem [shape: f32[1,256], index: 2, kind: input, shape index: {}]   ;;  %s806_s3 = inlined_call_operand.hbm [shape: bf16[256,128], index: 3, kind: input, shape index: {}]   ;;  %s807_s4 = inlined_call_operand.vmem [shape: f32[3,128], index: 4, kind: input, shape index: {}]   ;;  %s808_s5 = inlined_call_operand.hbm [shape: f32[16,128], index: 5, kind: output, shape index: {}]  }
   0x1   :  { %11 = vsyncpa [#allocation8], 0 }
   0x2   :  { %12 = vsyncpa [#allocation6], 0  ;;  %s714_s18 = smov [#allocation7]   ;;  %s715_s20 = smov [#allocation4]  }
   0x3   :  { %s30_s19 = sshll.u32 %s714_s18, 4  ;;  %s18_s21 = sshll.u32 %s715_s20, 4  ;;  %s31_s19 = int_to_ptr.vmem [resolvable:$true] %s30_s19  ;;  %s19_s21 = int_to_ptr.vmem [resolvable:$true] %s18_s21 }
   0x4   :  { %s636_s22 = scalar_lea.vmem %s31_s19, 2048  ;;  %p641_p1 = scmp.lt.s32.totalorder %s31_s19, %s31_s19 }
   0x5   :  { %p637_p0 = scmp.ne.s32.totalorder %s31_s19, %s636_s22  ;;  %p642_p2 = scmp.lt.s32.totalorder %s636_s22, %s636_s22 }
   0x7   :  { %p643_p3 = por %p642_p2, %p641_p1 }
   0x9   :  { %p644_p4 = pnand %p643_p3, %p637_p0 }
   0xb   :  { %647 = shalt.err (!%p644_p4)
}
   0xc   :  { %s716_s23 = smov 128   ;;  %s717_s24 = smov 8  }
   0xd   :  { %36 = dma.hbm_to_vmem [thread:$0]  %s804_s1, 2048, %s31_s19, [#allocation8], %s716_s23, %s716_s23, %s717_s24  }
   0xe   :  { %s656_s27 = scalar_lea.vmem %s19_s21, 256  ;;  %p661_p6 = scmp.lt.s32.totalorder %s19_s21, %s19_s21 }
   0xf   :  { %p657_p5 = scmp.ne.s32.totalorder %s19_s21, %s656_s27  ;;  %p662_p7 = scmp.lt.s32.totalorder %s656_s27, %s656_s27 }
  0x11   :  { %p663_p8 = por %p662_p7, %p661_p6 }
  0x13   :  { %p664_p9 = pnand %p663_p8, %p657_p5 }
  0x15   :  { %667 = shalt.err (!%p664_p9)
}
  0x16   :  { %24 = dma.hbm_to_vmem [thread:$0]  %s803_s0, 256, %s19_s21, [#allocation5], %s716_s23, %s716_s23, %s717_s24  }
  0x17   :  { %s718_s30 = smov [#allocation9]  }
  0x18   :  { %s44_s6 = sshll.u32 %s718_s30, 4  ;;  %s45_s6 = int_to_ptr.vmem [resolvable:$true] %s44_s6 }
  0x19   :  { %s676_s7 = scalar_lea.vmem %s45_s6, 2048  ;;  %p681_p11 = scmp.lt.s32.totalorder %s45_s6, %s45_s6 }
  0x1a   :  { %p677_p10 = scmp.ne.s32.totalorder %s45_s6, %s676_s7  ;;  %p682_p12 = scmp.lt.s32.totalorder %s676_s7, %s676_s7 }
  0x1c   :  { %p683_p13 = por %p682_p12, %p681_p11 }
  0x1e   :  { %p684_p0 = pnand %p683_p13, %p677_p10 }
  0x20   :  { %687 = shalt.err (!%p684_p0)
}
  0x21   :  { %s719_s1 = smov 64   ;;  %s720_s8 = smov 4  }
  0x22   :  { %50 = dma.hbm_to_vmem [thread:$0]  %s806_s3, 2048, %s45_s6, [#allocation8], %s719_s1, %s719_s1, %s720_s8  }
  0x23   :  { %708 = dma.done.wait [#allocation5], 256  }
  0x24   :  { %709 = vsyncadd [#allocation5], 4294967040 }
  0x25   :  { %710 = dma.done.wait [#allocation8], 4096  }
  0x26   :  { %711 = vsyncadd [#allocation8], 4294963200  ;;  %v768_v0 = vld [vmem:[#allocation4] sm:$0xff]  ;;  %v770_v1 = vld [vmem:[#allocation4 + $0x8] sm:$0xff]  ;;  %v721_v24 = vmov 0   ;;  %v106_v52 = vlaneseq  ;;  %s722_s14 = smov [#allocation10]  }
  0x27   :  { %70 = vadd.xlane.f32.xlu0 %v768_v0  ;;  %v579_v10 = vld [vmem:[#allocation7 + $0x74] ss:$8 sps:$4 sm:$0xff]   ;;  %v581_v11 = vld [vmem:[#allocation7 + $0x70] ss:$8 sps:$4 sm:$0xff]   ;;  %v582_v12 = vld [vmem:[#allocation7 + $0x64] ss:$8 sps:$4 sm:$0xff]   ;;  %278 = vmatprep.mubr.bf16.mxu0 %v721_v24 }
  0x28   :  { %246 = vmatprep.subr.bf16.mxu0 %v579_v10  ;;  %v584_v13 = vld [vmem:[#allocation7 + $0x60] ss:$8 sps:$4 sm:$0xff]   ;;  %v585_v14 = vld [vmem:[#allocation7 + $0x54] ss:$8 sps:$4 sm:$0xff]   ;;  %v587_v15 = vld [vmem:[#allocation7 + $0x50] ss:$8 sps:$4 sm:$0xff]  }
  0x29   :  { %247 = vmatpush1.bf16.msra.mxu0 %v581_v11  ;;  %v588_v16 = vld [vmem:[#allocation7 + $0x44] ss:$8 sps:$4 sm:$0xff]   ;;  %v590_v17 = vld [vmem:[#allocation7 + $0x40] ss:$8 sps:$4 sm:$0xff]   ;;  %v591_v18 = vld [vmem:[#allocation7 + $0x34] ss:$8 sps:$4 sm:$0xff]  }
  0x2a   :  { %248 = vmatprep.subr.bf16.mxu0 %v582_v12  ;;  %v593_v19 = vld [vmem:[#allocation7 + $0x30] ss:$8 sps:$4 sm:$0xff]   ;;  %v594_v20 = vld [vmem:[#allocation7 + $0x24] ss:$8 sps:$4 sm:$0xff]   ;;  %v596_v21 = vld [vmem:[#allocation7 + $0x20] ss:$8 sps:$4 sm:$0xff]  }
  0x2b   :  { %72 = vadd.xlane.f32.xlu0 %v770_v1  ;;  %v597_v22 = vld [vmem:[#allocation7 + $0x14] ss:$8 sps:$4 sm:$0xff]   ;;  %v599_v23 = vld [vmem:[#allocation7 + $0x10] ss:$8 sps:$4 sm:$0xff]   ;;  %v600_v25 = vld [vmem:[#allocation7 + $0x4] ss:$8 sps:$4 sm:$0xff]  }
  0x2c   :  { %v602_v26 = vld [vmem:[#allocation7] ss:$8 sps:$4 sm:$0xff]   ;;  %v604_v27 = vld [vmem:[#allocation9 + $0x78] sm:$0xff]   ;;  %v606_v29 = vld [vmem:[#allocation9 + $0x70] sm:$0xff]   ;;  %v107_v54 = vshrl.u32 %v106_v52, 7  ;;  %s493_s15 = sshll.u32 %s722_s14, 4  ;;  %s494_s15 = int_to_ptr.vmem [resolvable:$true] %s493_s15 }
  0x2d   :  { %249 = vmatpush1.bf16.msra.mxu0 %v584_v13  ;;  %v605_v28 = vld [vmem:[#allocation9 + $0x38] sm:$0xff]   ;;  %548 = vmatprep.subr.bf16.mxu1 %v604_v27  ;;  %v607_v30 = vld [vmem:[#allocation9 + $0x30] sm:$0xff]   ;;  %v608_v31 = vld [vmem:[#allocation9 + $0x68] sm:$0xff]   ;;  %s688_s16 = scalar_lea.vmem %s494_s15, 256  ;;  %p693_p2 = scmp.lt.s32.totalorder %s494_s15, %s494_s15 }
  0x2e   :  { %250 = vmatprep.subr.bf16.mxu0 %v585_v14  ;;  %549 = vmatpush3.bf16.msra.mxu1 %v605_v28  ;;  %v609_v32 = vld [vmem:[#allocation9 + $0x28] sm:$0xff]   ;;  %v610_v33 = vld [vmem:[#allocation9 + $0x60] sm:$0xff]   ;;  %v612_v35 = vld [vmem:[#allocation9 + $0x58] sm:$0xff]   ;;  %v108_v55 = vsub.s32 0, %v107_v54  ;;  %v114_v59 = vsub.s32 1, %v107_v54  ;;  %p689_p1 = scmp.ne.s32.totalorder %s494_s15, %s688_s16  ;;  %p694_p3 = scmp.lt.s32.totalorder %s688_s16, %s688_s16 }
  0x2f   :  { %550 = vmatprep.subr.bf16.mxu1 %v606_v29  ;;  %v611_v34 = vld [vmem:[#allocation9 + $0x20] sm:$0xff]   ;;  %v613_v36 = vld [vmem:[#allocation9 + $0x18] sm:$0xff]   ;;  %v69_v56 = vld [vmem:[%s807_s4] sm:$0x7] }
  0x30   :  { %v109_v58 = vrot.slane %v69_v56, %v108_v55  ;;  %v115_v62 = vrot.slane %v69_v56, %v114_v59  ;;  %v614_v10 = vld [vmem:[#allocation9 + $0x50] sm:$0xff]   ;;  %v616_v12 = vld [vmem:[#allocation9 + $0x48] sm:$0xff]   ;;  %v619_v14 = vld [vmem:[#allocation9] sm:$0xff]   ;;  %p695_p4 = por %p694_p3, %p693_p2 }
  0x31   :  { %251 = vmatpush1.bf16.msra.mxu0 %v587_v15  ;;  %v615_v11 = vld [vmem:[#allocation9 + $0x10] sm:$0xff]   ;;  %v617_v13 = vld [vmem:[#allocation9 + $0x8] sm:$0xff]  }
  0x32   :  { %252 = vmatprep.subr.bf16.mxu0 %v588_v16  ;;  %551 = vmatpush3.bf16.msra.mxu1 %v607_v30  ;;  %p696_p5 = pnand %p695_p4, %p689_p1 }
  0x33   :  { %552 = vmatprep.subr.bf16.mxu1 %v608_v31  ;;  %v480_v31 = vsub.s32 2, %v107_v54 }
  0x35   :  { %253 = vmatpush1.bf16.msra.mxu0 %v590_v17 }
  0x36   :  { %254 = vmatprep.subr.bf16.mxu0 %v591_v18  ;;  %553 = vmatpush3.bf16.msra.mxu1 %v609_v32  ;;  %v473_v32 = vld [vmem:[%s807_s4] sm:$0x7] }
  0x37   :  { %554 = vmatprep.subr.bf16.mxu1 %v610_v33 }
  0x39   :  { %255 = vmatpush1.bf16.msra.mxu0 %v593_v19 }
  0x3a   :  { %256 = vmatprep.subr.bf16.mxu0 %v594_v20  ;;  %555 = vmatpush3.bf16.msra.mxu1 %v611_v34  ;;  %v481_v34 = vrot.slane %v473_v32, %v480_v31 }
  0x3b   :  { %556 = vmatprep.subr.bf16.mxu1 %v612_v35 }
  0x3d   :  { %257 = vmatpush1.bf16.msra.mxu0 %v596_v21 }
  0x3e   :  { %258 = vmatprep.subr.bf16.mxu0 %v597_v22  ;;  %557 = vmatpush3.bf16.msra.mxu1 %v613_v36 }
  0x3f   :  { %558 = vmatprep.subr.bf16.mxu1 %v614_v10 }
  0x41   :  { %259 = vmatpush1.bf16.msra.mxu0 %v599_v23 }
  0x42   :  { %260 = vmatprep.subr.bf16.mxu0 %v600_v25  ;;  %559 = vmatpush3.bf16.msra.mxu1 %v615_v11 }
  0x43   :  { %560 = vmatprep.subr.bf16.mxu1 %v616_v12 }
  0x45   :  { %261 = vmatpush1.bf16.msra.mxu0 %v602_v26 }
  0x46   :  { %561 = vmatpush3.bf16.msra.mxu1 %v617_v13 }
  0xb0   :  { %v71_v2 = vpop.xlane.xlu0 %70 }
  0xb1   :  { %v74_v3 = vmul.f32 0.0078125, %v71_v2 }
  0xb3   :  { %v775_v4 = vsub.f32 %v768_v0, %v74_v3 }
  0xb4   :  { %v73_v5 = vpop.xlane.xlu0 %72 }
  0xb5   :  { %v75_v6 = vmul.f32 0.0078125, %v73_v5  ;;  %v78_v7 = vmul.f32 %v775_v4, %v775_v4 }
  0xb7   :  { %v780_v8 = vsub.f32 %v770_v1, %v75_v6  ;;  %80 = vadd.xlane.f32.xlu1 %v78_v7 }
  0xb9   :  { %v79_v9 = vmul.f32 %v780_v8, %v780_v8 }
  0xbb   :  { %82 = vadd.xlane.f32.xlu1 %v79_v9 }
 0x140   :  { %v81_v37 = vpop.xlane.xlu1 %80 }
 0x141   :  { %v84_v38 = vmul.f32 0.007874016, %v81_v37 }
 0x143   :  { %620 = vrsqrt.f32 %v84_v38  ;;  %vm88_vm0 = vcmp.eq.f32.partialorder %v84_v38, inf  ;;  %v91_v43 = vand.u32 2147483648, %v84_v38  ;;  %vm90_vm1 = vcmp.eq.f32.partialorder %v84_v38, 0.0 }
 0x144   :  { %v83_v39 = vpop.xlane.xlu1 %82 }
 0x145   :  { %v85_v40 = vmul.f32 0.007874016, %v83_v39 }
 0x147   :  { %622 = vrsqrt.f32 %v85_v40  ;;  %vm95_vm2 = vcmp.eq.f32.partialorder %v85_v40, inf  ;;  %v98_v49 = vand.u32 2147483648, %v85_v40  ;;  %vm97_vm3 = vcmp.eq.f32.partialorder %v85_v40, 0.0 }
 0x150   :  { %v621_v41 = vpop.eup %620 }
 0x151   :  { %v87_v42 = vmul.f32 %v621_v41, %v84_v38 }
 0x153   :  { %v89_v44 = vsel %vm88_vm0, %v84_v38, %v87_v42 }
 0x154   :  { %v623_v45 = vpop.eup %622  ;;  %v92_v46 = vsel %vm90_vm1, %v91_v43, %v89_v44 }
 0x155   :  { %v100_v47 = vadd.f32 1e-06, %v92_v46  ;;  %v94_v48 = vmul.f32 %v623_v45, %v85_v40 }
 0x157   :  { %624 = vrcp.f32 %v100_v47  ;;  %v96_v50 = vsel %vm95_vm2, %v85_v40, %v94_v48 }
 0x158   :  { %v99_v51 = vsel %vm97_vm3, %v98_v49, %v96_v50 }
 0x159   :  { %v101_v53 = vadd.f32 1e-06, %v99_v51 }
 0x15b   :  { %626 = vrcp.f32 %v101_v53 }
 0x164   :  { %v625_v57 = vpop.eup %624 }
 0x165   :  { %v104_v60 = vmul.f32 %v625_v57, %v775_v4  ;;  %v618_v4 = vld [vmem:[#allocation9 + $0x40] sm:$0xff]  }
 0x166   :  { %562 = vmatprep.subr.bf16.mxu1 %v618_v4 }
 0x167   :  { %v110_v63 = vmul.f32 %v109_v58, %v104_v60  ;;  %563 = vmatpush3.bf16.msra.mxu1 %v619_v14 }
 0x168   :  { %v627_v61 = vpop.eup %626 }
 0x169   :  { %v105_v2 = vmul.f32 %v627_v61, %v780_v8  ;;  %v116_v5 = vadd.f32 %v115_v62, %v110_v63  ;;  %v148_v8 = vld [vmem:[%s805_s2] sm:$0x3] }
 0x16a   :  { %v157_v16 = vrot.slane %v148_v8, %v114_v59  ;;  %v153_v17 = vrot.slane %v148_v8, %v108_v55 }
 0x16b   :  { %v111_v3 = vmul.f32 %v109_v58, %v105_v2 }
 0x16d   :  { %v117_v6 = vadd.f32 %v115_v62, %v111_v3 }
 0x16f   :  { %v546_v7 = vpack.c.bf16 %v117_v6, %v116_v5 }
 0x171   :  { %547 = vst [vmem:[#allocation2] sm:$0xff] %v546_v7  }
 0x178   :  { %v603_v9 = vld [vmem:[#allocation2] sm:$0xff]  }
 0x179   :  { %279 = vmatmul.mubr.bf16.vlgmr.msra.gmra.mxu0 %v603_v9 }
 0x239   :  { %v280_v15 = vpop.f32.mrf.mxu0 }
 0x23a   :  { %v281_v22 = vadd.f32 %v280_v15, %v153_v17 }
 0x23b   :  { %v282_v18 = vpop.f32.mrf.mxu0 }
 0x23c   :  { %v283_v20 = vadd.f32 %v282_v18, %v157_v16  ;;  %v289_v28 = vmax.f32 %v281_v22, 0.0 }
 0x23d   :  { %v284_v19 = vpop.f32.mrf.mxu0 }
 0x23e   :  { %v285_v21 = vadd.f32 %v284_v19, %v153_v17  ;;  %v290_v26 = vmax.f32 %v283_v20, 0.0 }
 0x23f   :  { %v286_v23 = vpop.f32.mrf.mxu0 }
 0x240   :  { %v287_v24 = vadd.f32 %v286_v23, %v157_v16  ;;  %v291_v25 = vmax.f32 %v285_v21, 0.0 }
 0x242   :  { %v292_v27 = vmax.f32 %v287_v24, 0.0  ;;  %v295_v30 = vpack.c.bf16 %v291_v25, %v289_v28 }
 0x244   :  { %v296_v29 = vpack.c.bf16 %v292_v27, %v290_v26 }
 0x246   :  { %457 = vmatprep.mubr.bf16.mxu1 %v296_v29 }
 0x247   :  { %458 = vmatmul.mubr.bf16.vlgmr.msra.gmra.mxu1 %v295_v30 }
 0x307   :  { %v564_v33 = vpop.f32.mrf.mxu1 }
 0x309   :  { %v565_v35 = vpop.f32.mrf.mxu1 }
 0x30a   :  { %v566_v36 = vadd.f32 %v565_v35, %v564_v33 }
 0x30b   :  { %v567_v37 = vpop.f32.mrf.mxu1 }
 0x30c   :  { %v482_v38 = vadd.f32 %v566_v36, %v481_v34 }
 0x30d   :  { %v568_v39 = vpop.f32.mrf.mxu1 }
 0x30e   :  { %v484_v40 = vadd.f32 %v482_v38, %v768_v0  ;;  %v569_v41 = vadd.f32 %v568_v39, %v567_v37 }
 0x310   :  { %486 = vst [vmem:[#allocation10] sm:$0xff] %v484_v40  ;;  %v483_v42 = vadd.f32 %v569_v41, %v481_v34 }
 0x312   :  { %v485_v43 = vadd.f32 %v483_v42, %v770_v1 }
 0x314   :  { %487 = vst [vmem:[#allocation10 + $0x8] sm:$0xff] %v485_v43 }
 0x315   :  { %699 = shalt.err (!%p696_p5)
}
 0x316   :  { %499 = dma.vmem_to_hbm [thread:$0]  %s494_s15, 256, %s808_s5, [#allocation6], %s716_s23, %s716_s23, %s717_s24  }
 0x317   :  { %712 = dma.done.wait [#allocation6], 256  }
 0x318   :  { %713 = vsyncadd [#allocation6], 4294967040 }
 0x319   :  { %503 = vsyncpa [#allocation5], 1 }
 0x31a   :  { %504 = vsyncpa [#allocation8], 1 }
 0x31b   :  { %505 = vsyncpa [#allocation6], 1 }

</bundles_post_ra>
